<compile_context>
chip_gen: v7x
topology: tpu7x:2x2x1
jax: 0.10.0
libtpu: 0.0.40
codegen_flags: <defaults>
</compile_context>

<pallas_src>
import jax
import jax.numpy as jnp
from jax.experimental import pallas as pl
from jax.experimental.pallas import tpu as pltpu  # noqa: F401  (TPU backend)


# ---------------------------------------------------------------- kernel ----

def make_fused_kernel(c0, n2, c2in, cout2):
    """Returns the fused kernel; c0 = #sigmoid channels, n2/c2in/cout2 static."""

    def kernel(x_ref, w01t_ref, b01_ref, w2t_ref, b2_ref, out_ref):
        # ---- stage 1: one matmul for both parallel 1x1 conv-transposes ----
        x = x_ref[...]                                        # (Cin, HW)
        z1 = jnp.dot(w01t_ref[...], x,
                     preferred_element_type=jnp.float32) + b01_ref[...]  # (C0+C1, HW)
        sig = jax.nn.sigmoid(z1)
        row = jax.lax.broadcasted_iota(jnp.int32, z1.shape, 0)
        # rows [0, c0) -> sigmoid(v1); rows [c0, ...) -> silu(v4)
        v7 = jnp.where(row < c0, sig, z1 * sig)               # == cat([v2, v6], ch)

        # ---- NCHW flatten + reshape to (n2, c2in, H, W):
        #      batch i of x2 is exactly rows [i*c2in, (i+1)*c2in) of v7 ----
        w2t = w2t_ref[...]                                    # (Cout2, C2in)
        b2 = b2_ref[...]                                      # (Cout2, 1)
        for i in range(n2):                                   # static unroll (n2=2)
            x2 = v7[i * c2in:(i + 1) * c2in, :]               # aligned sublane slice
            z2 = jnp.dot(w2t, x2, preferred_element_type=jnp.float32) + b2
            out_ref[i * cout2:(i + 1) * cout2, :] = (
                z2 * jax.nn.sigmoid(z2)).astype(out_ref.dtype)

    return kernel


# ------------------------------------------------------------------- glue ---

def _full_spec(shape):
    return pl.BlockSpec(shape, lambda: tuple(0 for _ in shape))


def model_forward(x1, params, reshape_to=(2, 8, 4, 4)):
    """x1: (1, Cin, H, W) float32 NCHW (the module's input has N=1)."""
    w0, b0, w1, b1, w2, b2 = params            # w*: (Cin, Cout) for 1x1 conv-T
    n, cin, hh, ww = x1.shape
    c0, c1 = w0.shape[1], w1.shape[1]
    n2, c2in, h2, w2sp = reshape_to
    cout2 = w2.shape[1]

    assert n == 1, "channel-major flatten trick assumes N=1 (as in the module)"
    assert hh * ww == h2 * w2sp, "pixel count must be preserved by the reshape"
    assert n * (c0 + c1) * hh * ww == n2 * c2in * h2 * w2sp, "flatten size mismatch"

    # Pack parameters once (trace-time, tiny):
    #   stage-1 fused weight [W0^T ; W1^T] : (c0+c1, Cin), fused bias (c0+c1, 1)
    w01t = jnp.concatenate([w0.T, w1.T], axis=0)
    b01 = jnp.concatenate([b0, b1]).reshape(-1, 1)
    w2t = jnp.transpose(w2)                    # (Cout2, C2in)
    b2c = b2.reshape(-1, 1)

    # NCHW with N=1 is already channel-major: pure view, no transpose.
    x2d = x1.reshape(cin, hh * ww)

    out_rows = n2 * cout2
    out2d = pl.pallas_call(
        make_fused_kernel(c0, n2, c2in, cout2),
        out_shape=jax.ShapeDtypeStruct((out_rows, h2 * w2sp), jnp.float32),
        in_specs=[_full_spec(x2d.shape), _full_spec(w01t.shape),
                  _full_spec(b01.shape), _full_spec(w2t.shape),
                  _full_spec(b2c.shape)],
        out_specs=_full_spec((out_rows, h2 * w2sp)),
    )(x2d, w01t, b01, w2t, b2c)

    # (N2*Cout2, H2*W2) -> (N2, Cout2, H2, W2): pure row-major view.
    return out2d.reshape(n2, cout2, h2, w2sp)


# -------------------------------------------------------------- reference ---

def reference_forward(x1, params, reshape_to=(2, 8, 4, 4)):
    w0, b0, w1, b1, w2, b2 = params

    def conv1x1(x, w, b):  # NCHW, weight (Cin, Cout)
        return jnp.einsum("nchw,cd->ndhw", x, w) + b[None, :, None, None]

    v1 = conv1x1(x1, w0, b0)
    v2 = jax.nn.sigmoid(v1)
    v4 = conv1x1(x1, w1, b1)
    v6 = v4 * jax.nn.sigmoid(v4)
    v7 = jnp.concatenate([v2, v6], axis=1).reshape(-1)
    x2 = v7.reshape(reshape_to)
    v8 = conv1x1(x2, w2, b2)
    return v8 * jax.nn.sigmoid(v8)


# ------------------------------------------------------------------- main ---

if __name__ == "__main__":
    key = jax.random.PRNGKey(0)
    k = jax.random.split(key, 7)

    N, CIN, H, W = 1, 8, 4, 4
    C0, C1 = 4, 12
    N2, C2IN, H2, W2SP = 2, 8, 4, 4
    C2 = 16

    x1 = jax.random.normal(k[0], (N, CIN, H, W), jnp.float32)

    # ConvTranspose2d(Cin, Cout, 1): weight (Cin, Cout, 1, 1) -> stored as (Cin, Cout)
    w0 = 0.1 * jax.random.normal(k[1], (CIN, C0), jnp.float32)
    b0 = 0.1 * jax.random.normal(k[2], (C0,), jnp.float32)
    w1 = 0.1 * jax.random.normal(k[3], (CIN, C1), jnp.float32)
    b1 = 0.1 * jax.random.normal(k[4], (C1,), jnp.float32)
    w2 = 0.1 * jax.random.normal(k[5], (C2IN, C2), jnp.float32)
    b2 = 0.1 * jax.random.normal(k[6], (C2,), jnp.float32)
    params = (w0, b0, w1, b1, w2, b2)

    out = model_forward(x1, params, reshape_to=(N2, C2IN, H2, W2SP))
    out = jax.block_until_ready(out)

    ref = reference_forward(x1, params, reshape_to=(N2, C2IN, H2, W2SP))
    assert out.shape == (N2, C2, H2, W2SP), out.shape
    assert jnp.allclose(out, ref, atol=1e-5, rtol=1e-5), "mismatch vs reference"

    print("KERNEL_OK")
</pallas_src>

<mosaic_0001>
module attributes {stable_mosaic.version = 11 : i64} {
  func.func @kernel(%arg0: memref<8x16xf32, #tpu.memory_space<vmem>>, %arg1: memref<16x8xf32, #tpu.memory_space<vmem>>, %arg2: memref<16x1xf32, #tpu.memory_space<vmem>>, %arg3: memref<16x8xf32, #tpu.memory_space<vmem>>, %arg4: memref<16x1xf32, #tpu.memory_space<vmem>>, %arg5: memref<32x16xf32, #tpu.memory_space<vmem>>) attributes {dimension_semantics = [], scalar_prefetch = 0 : i64, scratch_operands = 0 : i64, tpu.core_type = #tpu.core_type<tc>} {
    %c0 = arith.constant 0 : index
    %c0_0 = arith.constant 0 : index
    %0 = vector.load %arg0[%c0, %c0_0] : memref<8x16xf32, #tpu.memory_space<vmem>>, vector<8x16xf32>
    %c0_1 = arith.constant 0 : index
    %c0_2 = arith.constant 0 : index
    %1 = vector.load %arg1[%c0_1, %c0_2] : memref<16x8xf32, #tpu.memory_space<vmem>>, vector<16x8xf32>
    %cst = arith.constant dense<0.000000e+00> : vector<16x16xf32>
    %2 = tpu.matmul %1, %0, %cst {dimension_numbers = #tpu.dot_dimension_numbers<[1], [0], [0], [1], [0, 0, 1, 1], [], []>} : vector<16x8xf32>, vector<8x16xf32>, vector<16x16xf32> -> vector<16x16xf32>
    %c0_3 = arith.constant 0 : index
    %c0_4 = arith.constant 0 : index
    %3 = vector.load %arg2[%c0_3, %c0_4] : memref<16x1xf32, #tpu.memory_space<vmem>>, vector<16x1xf32>
    %4 = vector.broadcast %3 : vector<16x1xf32> to vector<16x16xf32>
    %5 = arith.addf %2, %4 : vector<16x16xf32>
    %6 = arith.negf %5 : vector<16x16xf32>
    %7 = math.exp %6 : vector<16x16xf32>
    %cst_5 = arith.constant 1.000000e+00 : f32
    %8 = vector.broadcast %cst_5 : f32 to vector<16x16xf32>
    %9 = arith.addf %8, %7 : vector<16x16xf32>
    %10 = arith.divf %8, %9 : vector<16x16xf32>
    %11 = tpu.iota {dimensions = array<i32: 0>} : vector<16x16xi32>
    %c4_i32 = arith.constant 4 : i32
    %12 = vector.broadcast %c4_i32 : i32 to vector<16x16xi32>
    %13 = arith.cmpi slt, %11, %12 : vector<16x16xi32>
    %14 = arith.mulf %5, %10 : vector<16x16xf32>
    %15 = arith.select %13, %10, %14 : vector<16x16xi1>, vector<16x16xf32>
    %c0_6 = arith.constant 0 : index
    %c0_7 = arith.constant 0 : index
    %16 = vector.load %arg3[%c0_6, %c0_7] : memref<16x8xf32, #tpu.memory_space<vmem>>, vector<16x8xf32>
    %c0_8 = arith.constant 0 : index
    %c0_9 = arith.constant 0 : index
    %17 = vector.load %arg4[%c0_8, %c0_9] : memref<16x1xf32, #tpu.memory_space<vmem>>, vector<16x1xf32>
    %18 = vector.extract_strided_slice %15 {offsets = [0, 0], sizes = [8, 16], strides = [1, 1]} : vector<16x16xf32> to vector<8x16xf32>
    %cst_10 = arith.constant dense<0.000000e+00> : vector<16x16xf32>
    %19 = tpu.matmul %16, %18, %cst_10 {dimension_numbers = #tpu.dot_dimension_numbers<[1], [0], [0], [1], [0, 0, 1, 1], [], []>} : vector<16x8xf32>, vector<8x16xf32>, vector<16x16xf32> -> vector<16x16xf32>
    %20 = vector.broadcast %17 : vector<16x1xf32> to vector<16x16xf32>
    %21 = arith.addf %19, %20 : vector<16x16xf32>
    %22 = arith.negf %21 : vector<16x16xf32>
    %23 = math.exp %22 : vector<16x16xf32>
    %cst_11 = arith.constant 1.000000e+00 : f32
    %24 = vector.broadcast %cst_11 : f32 to vector<16x16xf32>
    %25 = arith.addf %24, %23 : vector<16x16xf32>
    %26 = arith.divf %24, %25 : vector<16x16xf32>
    %27 = arith.mulf %21, %26 : vector<16x16xf32>
    %c0_12 = arith.constant 0 : index
    %c0_13 = arith.constant 0 : index
    %28 = vector.load %arg5[%c0_12, %c0_13] : memref<32x16xf32, #tpu.memory_space<vmem>>, vector<16x16xf32>
    tpu.vector_store %arg5[%c0_12, %c0_13], %27 {strides = array<i32>} : memref<32x16xf32, #tpu.memory_space<vmem>>, vector<16x16xf32>,
    %29 = vector.extract_strided_slice %15 {offsets = [8, 0], sizes = [8, 16], strides = [1, 1]} : vector<16x16xf32> to vector<8x16xf32>
    %cst_14 = arith.constant dense<0.000000e+00> : vector<16x16xf32>
    %30 = tpu.matmul %16, %29, %cst_14 {dimension_numbers = #tpu.dot_dimension_numbers<[1], [0], [0], [1], [0, 0, 1, 1], [], []>} : vector<16x8xf32>, vector<8x16xf32>, vector<16x16xf32> -> vector<16x16xf32>
    %31 = vector.broadcast %17 : vector<16x1xf32> to vector<16x16xf32>
    %32 = arith.addf %30, %31 : vector<16x16xf32>
    %33 = arith.negf %32 : vector<16x16xf32>
    %34 = math.exp %33 : vector<16x16xf32>
    %cst_15 = arith.constant 1.000000e+00 : f32
    %35 = vector.broadcast %cst_15 : f32 to vector<16x16xf32>
    %36 = arith.addf %35, %34 : vector<16x16xf32>
    %37 = arith.divf %35, %36 : vector<16x16xf32>
    %38 = arith.mulf %32, %37 : vector<16x16xf32>
    %c16 = arith.constant 16 : index
    %c0_16 = arith.constant 0 : index
    %39 = vector.load %arg5[%c16, %c0_16] : memref<32x16xf32, #tpu.memory_space<vmem>>, vector<16x16xf32>
    tpu.vector_store %arg5[%c16, %c0_16], %38 {strides = array<i32>} : memref<32x16xf32, #tpu.memory_space<vmem>>, vector<16x16xf32>,
    return
  }
}

</mosaic_0001>

<bundles_post_ra>
// kernel: tpu_custom_call.1
= control target key start
LH: loop header
LB: loop body
LE: loop exit
PB: predicated region body
PF: predicated region fallthrough
CT: control target
= control target key end

     0   :  { %vm35_vm0 = vcmask 64512   ;;  %v408_v3 = vmov 0   ;;  %v129_v21 = vlaneseq  ;;  %vm247_vm2 = vcmask 130048   ;;  %s484_s0 = inlined_call_operand.vmem [shape: f32[8,16], index: 0, kind: input, shape index: {}]   ;;  %s485_s1 = inlined_call_operand.vmem [shape: f32[16,8], index: 1, kind: input, shape index: {}]   ;;  %s486_s2 = inlined_call_operand.vmem [shape: f32[16,1], index: 2, kind: input, shape index: {}]   ;;  %s487_s3 = inlined_call_operand.vmem [shape: f32[16,8], index: 3, kind: input, shape index: {}]   ;;  %s488_s4 = inlined_call_operand.vmem [shape: f32[16,1], index: 4, kind: input, shape index: {}]   ;;  %s489_s5 = inlined_call_operand.vmem [shape: f32[32,16], index: 5, kind: output, shape index: {}]  }
   0x1   :  { %v20_v0 = vld [vmem:[%s484_s0] sm:$0xff]  ;;  %v22_v2 = vld [vmem:[%s485_s1 + $0x8] sm:$0xff]  ;;  %382 = vset.pattern.permute.xlu0 %v408_v3  ;;  %383 = vset.pattern.permute.xlu1 %v408_v3 }
   0x2   :  { %v21_v1 = vld [vmem:[%s485_s1] sm:$0xff]  ;;  %366 = vmatprep.subr.mxu0 %v20_v0  ;;  %v24_v5 = vld [vmem:[%s486_s2 + $0x8] sm:$0xff]  ;;  %v130_v22 = vshrl.u32 %v129_v21, 7 }
   0x3   :  { %368 = vmatprep.mubr.msk.f32.mxu0 %vm35_vm0, %v21_v1  ;;  %v23_v4 = vld [vmem:[%s486_s2] sm:$0xff]  ;;  %367 = vmatpush3.msra.mxu0 %v20_v0  ;;  %v141_v8 = vld [vmem:[%s488_s4 + $0x8] sm:$0xff] }
   0x4   :  { %27 = vperm.xlu0 %382, %v23_v4   ;;  %369 = vmatmul.mubr.msk.f32.vlgmr.msra.gmra.mrb[0].mxu0 %vm35_vm0, %v22_v2  ;;  %v138_v6 = vld [vmem:[%s487_s3] sm:$0xff]  ;;  %vm132_vm1 = vcmp.lt.s32.totalorder %v130_v22, 4  ;;  %v139_v27 = vld [vmem:[%s487_s3 + $0x8] sm:$0xff] }
   0x5   :  { %378 = vmatprep.mubr.msk.f32.mxu0 %vm35_vm0, %v138_v6  ;;  %373 = vmatprep.mubr.msk.f32.mxu1 %vm35_vm0, %v138_v6  ;;  %v140_v7 = vld [vmem:[%s488_s4] sm:$0xff] }
   0x6   :  { %144 = vperm.xlu1 %383, %v140_v7  }
   0x8   :  { %32 = vperm.xlu0 %382, %v24_v5  }
   0xa   :  { %149 = vperm.xlu1 %383, %v141_v8  }
  0x83   :  { %v28_v9 = vpop.permute.xlu0 %27 }
  0x85   :  { %v145_v29 = vpop.permute.xlu1 %144 }
  0x87   :  { %v33_v10 = vpop.permute.xlu0 %32 }
  0x89   :  { %v150_v30 = vpop.permute.xlu1 %149 }
  0xd7   :  { %v370_v11 = vpop.f32.mrb[0].mxu0 }
  0xd8   :  { %v114_v12 = vadd.f32 %v370_v11, %v33_v10  ;;  %v108_v13 = vpop.f32.mrb[1].mxu0 }
  0xd9   :  { %v109_v14 = vadd.f32 %v108_v13, %v28_v9 }
  0xda   :  { %v348_v15 = vmul.f32 -1.442695, %v114_v12 }
  0xdb   :  { %v347_v16 = vmul.f32 -1.442695, %v109_v14 }
  0xdc   :  { %384 = vpow2.f32 %v348_v15 }
  0xdd   :  { %386 = vpow2.f32 %v347_v16 }
  0xe6   :  { %v385_v17 = vpop.eup %384 }
  0xe7   :  { %v387_v18 = vpop.eup %386  ;;  %v124_v19 = vadd.f32 1.0, %v385_v17 }
  0xe8   :  { %v123_v20 = vadd.f32 1.0, %v387_v18 }
  0xe9   :  { %388 = vrcp.f32 %v124_v19 }
  0xea   :  { %390 = vrcp.f32 %v123_v20 }
  0xf3   :  { %v389_v23 = vpop.eup %388 }
  0xf4   :  { %v391_v24 = vpop.eup %390  ;;  %v135_v25 = vmul.f32 %v389_v23, %v114_v12 }
  0xf5   :  { %v134_v26 = vmul.f32 %v391_v24, %v109_v14 }
  0xf6   :  { %376 = vmatprep.subr.mxu0 %v135_v25 }
  0xf7   :  { %377 = vmatpush3.msra.mxu0 %v135_v25  ;;  %v136_v28 = vsel %vm132_vm1, %v391_v24, %v134_v26 }
  0xf8   :  { %371 = vmatprep.subr.mxu1 %v136_v28  ;;  %379 = vmatmul.mubr.msk.f32.vlgmr.msra.gmra.mrb[2].mxu0 %vm35_vm0, %v139_v27 }
  0xf9   :  { %372 = vmatpush3.msra.mxu1 %v136_v28 }
  0xfa   :  { %374 = vmatmul.mubr.msk.f32.vlgmr.msra.gmra.mrb[0].mxu1 %vm35_vm0, %v139_v27 }
 0x1cb   :  { %v380_v31 = vpop.f32.mrb[2].mxu0 }
 0x1cc   :  { %v322_v32 = vadd.f32 %v380_v31, %v150_v30  ;;  %v316_v33 = vpop.f32.mrb[3].mxu0 }
 0x1cd   :  { %v317_v34 = vadd.f32 %v316_v33, %v145_v29  ;;  %v375_v35 = vpop.f32.mrb[0].mxu1 }
 0x1ce   :  { %v356_v36 = vmul.f32 -1.442695, %v322_v32  ;;  %v230_v37 = vadd.f32 %v375_v35, %v150_v30  ;;  %v224_v38 = vpop.f32.mrb[1].mxu1 }
 0x1cf   :  { %v355_v39 = vmul.f32 -1.442695, %v317_v34  ;;  %v225_v40 = vadd.f32 %v224_v38, %v145_v29 }
 0x1d0   :  { %392 = vpow2.f32 %v356_v36  ;;  %v352_v41 = vmul.f32 -1.442695, %v230_v37 }
 0x1d1   :  { %394 = vpow2.f32 %v355_v39  ;;  %v351_v42 = vmul.f32 -1.442695, %v225_v40 }
 0x1d2   :  { %396 = vpow2.f32 %v352_v41 }
 0x1d3   :  { %398 = vpow2.f32 %v351_v42 }
 0x1da   :  { %v393_v43 = vpop.eup %392 }
 0x1db   :  { %v395_v44 = vpop.eup %394  ;;  %v332_v45 = vadd.f32 1.0, %v393_v43 }
 0x1dc   :  { %v397_v46 = vpop.eup %396  ;;  %v331_v47 = vadd.f32 1.0, %v395_v44 }
 0x1dd   :  { %v399_v48 = vpop.eup %398  ;;  %400 = vrcp.f32 %v332_v45  ;;  %v240_v49 = vadd.f32 1.0, %v397_v46 }
 0x1de   :  { %402 = vrcp.f32 %v331_v47  ;;  %v239_v50 = vadd.f32 1.0, %v399_v48 }
 0x1df   :  { %404 = vrcp.f32 %v240_v49 }
 0x1e0   :  { %406 = vrcp.f32 %v239_v50 }
 0x1e7   :  { %v401_v51 = vpop.eup %400 }
 0x1e8   :  { %v403_v52 = vpop.eup %402  ;;  %v338_v53 = vmul.f32 %v401_v51, %v322_v32 }
 0x1e9   :  { %v405_v54 = vpop.eup %404  ;;  %v337_v55 = vmul.f32 %v403_v52, %v317_v34 }
 0x1ea   :  { %v407_v56 = vpop.eup %406  ;;  %340 = vst.msk [vmem:[%s489_s5 + $0x18] sm:$0xff] %vm247_vm2, %v338_v53  ;;  %v246_v57 = vmul.f32 %v405_v54, %v230_v37 }
 0x1eb   :  { %339 = vst.msk [vmem:[%s489_s5 + $0x10] sm:$0xff] %vm247_vm2, %v337_v55  ;;  %v245_v58 = vmul.f32 %v407_v56, %v225_v40 }
 0x1ec   :  { %249 = vst.msk [vmem:[%s489_s5 + $0x8] sm:$0xff] %vm247_vm2, %v246_v57 }
 0x1ed   :  { %248 = vst.msk [vmem:[%s489_s5] sm:$0xff] %vm247_vm2, %v245_v58 }

</bundles_post_ra>
